<compile_context>
chip_gen: v7x
topology: tpu7x:2x2x1
jax: 0.10.0
libtpu: 0.0.40
codegen_flags: <defaults>
</compile_context>

<pallas_src>
import functools
import math

import jax
import jax.numpy as jnp
from jax import lax
from jax.experimental import pallas as pl
from jax.experimental.pallas import tpu as pltpu


def _round_up(x, m):
    return ((x + m - 1) // m) * m


def _cdiv(a, b):
    return -(-a // b)


def _neighbor_aggr_kernel(nf_ref, w_ref, b_ref, o_ref, acc_ref, *,
                          aggr_method, num_neigh, neigh_chunk, num_chunks,
                          ragged, lhs_dtype):
    """One grid step.

    nf_ref : (tile_src, neigh_chunk, input_dim) VMEM tile, original HBM layout.
    w_ref  : (input_dim, d_out_p)   whole weight (only d_out padded).
    b_ref  : (1, d_out_p)           f32 bias (zeros if unused).
    o_ref  : (tile_src, d_out_p)    output tile (resident across neighbor axis).
    acc_ref: (tile_src, input_dim)  f32 scratch accumulator (used when chunked).
    """
    k = pl.program_id(1)

    nf = nf_ref[...]  # native dtype

    if aggr_method == "max":
        if ragged:
            if jnp.issubdtype(nf.dtype, jnp.floating):
                ident = jnp.array(jnp.finfo(nf.dtype).min, dtype=nf.dtype)
            else:
                ident = jnp.array(jnp.iinfo(nf.dtype).min, dtype=nf.dtype)
            n_valid = num_neigh - k * neigh_chunk
            nidx = lax.broadcasted_iota(jnp.int32, nf.shape, 1)
            nf = jnp.where(nidx < n_valid, nf, ident)
        # max is exact in the native dtype: reduce first, upcast only the
        # small (tile_src, input_dim) partial (saves VPU/vregs for bf16).
        part = jnp.max(nf, axis=1).astype(jnp.float32)
    else:  # "sum" or "mean": accumulate in f32
        nf32 = nf.astype(jnp.float32)
        if ragged:
            n_valid = num_neigh - k * neigh_chunk
            nidx = lax.broadcasted_iota(jnp.int32, nf32.shape, 1)
            nf32 = jnp.where(nidx < n_valid, nf32, 0.0)
        part = jnp.sum(nf32, axis=1)

    def _project_and_store(aggr_f32):
        if aggr_method == "mean":
            aggr_f32 = aggr_f32 * (1.0 / float(num_neigh))
        hidden = jnp.dot(aggr_f32.astype(lhs_dtype), w_ref[...],
                         preferred_element_type=jnp.float32)
        hidden = hidden + b_ref[...]
        o_ref[...] = hidden.astype(o_ref.dtype)

    if num_chunks == 1:
        # Common GraphSAGE case: whole neighbor axis in one block, no scratch.
        _project_and_store(part)
    else:
        @pl.when(k == 0)
        def _():
            acc_ref[...] = part

        @pl.when(k > 0)
        def _():
            if aggr_method == "max":
                acc_ref[...] = jnp.maximum(acc_ref[...], part)
            else:
                acc_ref[...] = acc_ref[...] + part

        @pl.when(k == num_chunks - 1)
        def _():
            _project_and_store(acc_ref[...])


def neighbor_aggregator(neighbor_feature, weight, bias=None, aggr_method="max",
                        tile_src=None, neigh_chunk=None):
    """Pallas equivalent of NeighborAggregator.forward.

    neighbor_feature: (num_src, num_neigh, input_dim)
    weight:           (input_dim, output_dim)
    bias:             optional (output_dim,)
    returns:          (num_src, output_dim)
    """
    if aggr_method not in ("mean", "sum", "max"):
        raise ValueError(
            "Unknown aggr type, expected sum, max, or mean, but got "
            f"{aggr_method}")

    num_src, num_neigh, input_dim = neighbor_feature.shape
    w_in, output_dim = weight.shape
    assert w_in == input_dim, "weight/input_dim mismatch"

    in_dtype = neighbor_feature.dtype
    out_dtype = jnp.promote_types(in_dtype, weight.dtype)
    itemsize = jnp.dtype(in_dtype).itemsize

    # ---- generation-aware VMEM budgets ----
    try:
        vmem_cap = pltpu.get_tpu_info().vmem_capacity_bytes
    except Exception:  # query unavailable -> conservative (v7x-safe) defaults
        vmem_cap = 64 * 1024 * 1024
    if vmem_cap >= 100 * 1024 * 1024:      # v5e / v6e: 128 MiB per TC
        nf_block_budget = 28 * 1024 * 1024
        vmem_limit = 96 * 1024 * 1024
    else:                                   # v7x: 64 MiB per TC
        nf_block_budget = 12 * 1024 * 1024
        vmem_limit = 48 * 1024 * 1024

    # Lane padding Mosaic applies inside VMEM (layout only, never in HBM).
    d_in_vmem = _round_up(max(input_dim, 1), 128)
    d_out_p = _round_up(max(output_dim, 1), 128)

    # Per-element VMEM cost of the nf block: 2x for double buffering, plus an
    # f32 upcast temp when sum/mean must widen sub-32-bit inputs in-kernel.
    bytes_per_elem = 2 * itemsize
    if aggr_method in ("sum", "mean") and itemsize < 4:
        bytes_per_elem += 4

    def nf_block_bytes(ts, nc):
        return ts * _round_up(nc, 8) * d_in_vmem * bytes_per_elem

    # ---- src tile: large for the HBM roofline, but guarantee >=2 tiles so
    # both v7x TensorCores get work; multiple of 8 for the output store. ----
    if tile_src is None:
        tile_src = min(512, _round_up(_cdiv(num_src, 2), 8))
    tile_src = max(8, _round_up(min(tile_src, num_src), 8))

    # ---- neighbor chunk: full axis if it fits the block budget, else a
    # multiple of 8 (sublane-aligned); shrink tile_src only as a last resort.
    if neigh_chunk is None:
        if nf_block_bytes(tile_src, num_neigh) <= nf_block_budget:
            neigh_chunk = num_neigh
        else:
            if nf_block_bytes(tile_src, 8) > nf_block_budget:
                ts = nf_block_budget // (8 * d_in_vmem * bytes_per_elem)
                tile_src = max(8, (ts // 8) * 8)
            per_neigh = tile_src * d_in_vmem * bytes_per_elem
            neigh_chunk = max(8, ((nf_block_budget // per_neigh) // 8) * 8)
    if neigh_chunk >= num_neigh or num_neigh <= 8:
        neigh_chunk = num_neigh
    else:
        neigh_chunk = max(8, (neigh_chunk // 8) * 8)

    num_chunks = _cdiv(num_neigh, neigh_chunk)
    ragged = (num_neigh % neigh_chunk) != 0
    num_src_tiles = _cdiv(num_src, tile_src)
    num_src_p = num_src_tiles * tile_src

    # ---- only the small parameters get padded / cast (never the big tensor) --
    w_p = jnp.pad(weight, ((0, 0), (0, d_out_p - output_dim)))
    if bias is None:
        b_p = jnp.zeros((1, d_out_p), dtype=jnp.float32)
    else:
        b_p = jnp.pad(bias.astype(jnp.float32).reshape(1, output_dim),
                      ((0, 0), (0, d_out_p - output_dim)))

    # bf16 weights feed the MXU natively (f32 accumulation); otherwise f32 LHS.
    lhs_dtype = weight.dtype if weight.dtype == jnp.bfloat16 else jnp.float32

    kernel = functools.partial(
        _neighbor_aggr_kernel, aggr_method=aggr_method, num_neigh=num_neigh,
        neigh_chunk=neigh_chunk, num_chunks=num_chunks, ragged=ragged,
        lhs_dtype=lhs_dtype)

    cost = pl.CostEstimate(
        flops=2 * num_src * input_dim * output_dim
        + num_src * num_neigh * input_dim,
        transcendentals=0,
        bytes_accessed=(num_src * num_neigh * input_dim * itemsize
                        + input_dim * output_dim * jnp.dtype(weight.dtype).itemsize
                        + num_src * output_dim * jnp.dtype(out_dtype).itemsize),
    )

    out_p = pl.pallas_call(
        kernel,
        out_shape=jax.ShapeDtypeStruct((num_src_p, d_out_p), out_dtype),
        grid_spec=pltpu.PrefetchScalarGridSpec(
            num_scalar_prefetch=0,
            grid=(num_src_tiles, num_chunks),
            in_specs=[
                # Original HBM layout; src tiles "parallel", neighbor chunks on
                # the trailing "arbitrary" (reduction) axis. Last dim is the
                # full (un-padded) feature dim.
                pl.BlockSpec((tile_src, neigh_chunk, input_dim),
                             lambda i, k: (i, k, 0)),
                pl.BlockSpec((input_dim, d_out_p), lambda i, k: (0, 0)),
                pl.BlockSpec((1, d_out_p), lambda i, k: (0, 0)),
            ],
            out_specs=pl.BlockSpec((tile_src, d_out_p), lambda i, k: (i, 0)),
            scratch_shapes=[pltpu.VMEM((tile_src, input_dim), jnp.float32)],
        ),
        compiler_params=pltpu.CompilerParams(
            dimension_semantics=("parallel", "arbitrary"),
            vmem_limit_bytes=vmem_limit,
        ),
        cost_estimate=cost,
    )(neighbor_feature, w_p, b_p)

    return out_p[:num_src, :output_dim]


def kaiming_uniform_init(key, shape, dtype=jnp.float32):
    # Mirrors torch.nn.init.kaiming_uniform_ (a=0, fan_in = shape[1] for 2D).
    fan_in = shape[1]
    gain = math.sqrt(2.0)
    bound = gain * math.sqrt(3.0 / fan_in)
    return jax.random.uniform(key, shape, dtype=dtype, minval=-bound, maxval=bound)


if __name__ == "__main__":
    # Module config (defaults: use_bias=False, aggr_method='max')
    input_dim = 32
    output_dim = 16
    num_src, num_neigh = 16, 8

    key = jax.random.PRNGKey(0)
    k_w, k_b, k_x = jax.random.split(key, 3)
    weight = kaiming_uniform_init(k_w, (input_dim, output_dim))
    bias = jax.random.normal(k_b, (output_dim,), dtype=jnp.float32)
    neighbor_feature = jax.random.normal(
        k_x, (num_src, num_neigh, input_dim), dtype=jnp.float32)

    def reference(nf, w, b, method):
        if method == "mean":
            a = jnp.mean(nf, axis=1)
        elif method == "sum":
            a = jnp.sum(nf, axis=1)
        else:
            a = jnp.max(nf, axis=1)
        h = a @ w
        if b is not None:
            h = h + b
        return h

    # Exercise all three aggregation modes and both bias paths.
    configs = [("max", None), ("mean", bias), ("sum", bias)]
    for method, b in configs:
        out = neighbor_aggregator(neighbor_feature, weight, bias=b,
                                  aggr_method=method)
        out = jax.block_until_ready(out)
        expect = reference(neighbor_feature, weight, b, method)
        assert out.shape == (num_src, output_dim)
        assert jnp.allclose(out, expect, atol=1e-5, rtol=1e-5), method

    print("KERNEL_OK")
</pallas_src>

<mosaic_0001>
module attributes {stable_mosaic.version = 11 : i64} {
  func.func @_neighbor_aggr_kernel(%arg0: i32, %arg1: i32, %arg2: memref<8x8x32xf32, #tpu.memory_space<vmem>>, %arg3: memref<32x128xf32, #tpu.memory_space<vmem>>, %arg4: memref<1x128xf32, #tpu.memory_space<vmem>>, %arg5: memref<8x128xf32, #tpu.memory_space<vmem>>, %arg6: memref<8x32xf32, #tpu.memory_space<vmem>>) attributes {dimension_semantics = [#tpu.dimension_semantics<parallel>, #tpu.dimension_semantics<arbitrary>], iteration_bounds = array<i64: 2, 1>, scalar_prefetch = 0 : i64, scratch_operands = 1 : i64, tpu.core_type = #tpu.core_type<tc>, window_params = [{transform_indices = @transform_0, window_bounds = array<i64: 8, 8, 32>}, {pipeline_mode = #tpu.pipeline_mode<synchronous>, transform_indices = @transform_1, window_bounds = array<i64: 32, 128>}, {pipeline_mode = #tpu.pipeline_mode<synchronous>, transform_indices = @transform_2, window_bounds = array<i64: 1, 128>}, {transform_indices = @transform_3, window_bounds = array<i64: 8, 128>}]} {
    %c0 = arith.constant 0 : index
    %c0_0 = arith.constant 0 : index
    %c0_1 = arith.constant 0 : index
    %0 = vector.load %arg2[%c0, %c0_0, %c0_1] : memref<8x8x32xf32, #tpu.memory_space<vmem>>, vector<8x8x32xf32>
    %cst = arith.constant dense<0xFF800000> : vector<8x32xf32>
    %1 = vector.multi_reduction <maximumf>, %0, %cst [1] : vector<8x8x32xf32> to vector<8x32xf32>
    %c0_2 = arith.constant 0 : index
    %c0_3 = arith.constant 0 : index
    %2 = vector.load %arg3[%c0_2, %c0_3] : memref<32x128xf32, #tpu.memory_space<vmem>>, vector<32x128xf32>
    %cst_4 = arith.constant dense<0.000000e+00> : vector<8x128xf32>
    %3 = tpu.matmul %1, %2, %cst_4 {dimension_numbers = #tpu.dot_dimension_numbers<[1], [0], [0], [1], [0, 0, 1, 1], [], []>} : vector<8x32xf32>, vector<32x128xf32>, vector<8x128xf32> -> vector<8x128xf32>
    %c0_5 = arith.constant 0 : index
    %c0_6 = arith.constant 0 : index
    %4 = vector.load %arg4[%c0_5, %c0_6] : memref<1x128xf32, #tpu.memory_space<vmem>>, vector<1x128xf32>
    %5 = vector.broadcast %4 : vector<1x128xf32> to vector<8x128xf32>
    %6 = arith.addf %3, %5 : vector<8x128xf32>
    %c0_7 = arith.constant 0 : index
    %c0_8 = arith.constant 0 : index
    %7 = vector.load %arg5[%c0_7, %c0_8] : memref<8x128xf32, #tpu.memory_space<vmem>>, vector<8x128xf32>
    tpu.vector_store %arg5[%c0_7, %c0_8], %6 {strides = array<i32>} : memref<8x128xf32, #tpu.memory_space<vmem>>, vector<8x128xf32>,
    return
  }
  func.func @transform_0(%arg0: i32, %arg1: i32) -> (i32, i32, i32) {
    %c0_i32 = arith.constant 0 : i32
    %c0_i32_0 = arith.constant 0 : i32
    return %arg0, %arg1, %c0_i32 : i32, i32, i32
  }
  func.func @transform_1(%arg0: i32, %arg1: i32) -> (i32, i32) {
    %c0_i32 = arith.constant 0 : i32
    %c0_i32_0 = arith.constant 0 : i32
    %c0_i32_1 = arith.constant 0 : i32
    return %c0_i32, %c0_i32_0 : i32, i32
  }
  func.func @transform_2(%arg0: i32, %arg1: i32) -> (i32, i32) {
    %c0_i32 = arith.constant 0 : i32
    %c0_i32_0 = arith.constant 0 : i32
    %c0_i32_1 = arith.constant 0 : i32
    return %c0_i32, %c0_i32_0 : i32, i32
  }
  func.func @transform_3(%arg0: i32, %arg1: i32) -> (i32, i32) {
    %c0_i32 = arith.constant 0 : i32
    %c0_i32_0 = arith.constant 0 : i32
    return %arg0, %c0_i32 : i32, i32
  }
}

</mosaic_0001>

<bundles_post_ra>
// kernel: tpu_custom_call.1
= control target key start
LH: loop header
LB: loop body
LE: loop exit
PB: predicated region body
PF: predicated region fallthrough
CT: control target
= control target key end

     0   :  { %8 = vsyncpa [#allocation4], 0  ;;  %s1025_s0 = inlined_call_operand.hbm [shape: f32[16,8,32], index: 0, kind: input, shape index: {}]   ;;  %s1026_s1 = inlined_call_operand.hbm [shape: f32[32,128], index: 1, kind: input, shape index: {}]   ;;  %s1027_s2 = inlined_call_operand.vmem [shape: f32[1,128], index: 2, kind: input, shape index: {}]   ;;  %s1028_s3 = inlined_call_operand.hbm [shape: f32[16,128], index: 3, kind: output, shape index: {}]  }
   0x1   :  { %10 = vsyncpa [#allocation4 + $0x1], 0 }
   0x2   :  { %11 = vsyncpa [#allocation7], 0 }
   0x3   :  { %12 = vsyncpa [#allocation5], 0 }
   0x4   :  { %14 = vsyncpa [#allocation5 + $0x1], 0  ;;  %s785_s12 = smov 0   ;;  %s787_s13 = smov 0  }
   0x5   :  { %s789_s14 = smov 0   ;;  %s791_s15 = smov 0  }
   0x6   :  { %s793_s16 = smov 0   ;;  %s795_s17 = smov 0  }
   0x7 LB: > { %s492_s18 = sadd.s32 4294967295, %s755_s17   ;;  %s493_s19 = sadd.s32 4294967294, %s755_s17   ;;  %s755_s17 = sphi %s795_s17, %s20_s17   ;;  %s751_s16 = sphi %s793_s16, %s1052_s16   ;;  %s747_s15 = sphi %s791_s15, %s1051_s15   ;;  %s743_s14 = sphi %s789_s14, %s1050_s14   ;;  %s739_s13 = sphi %s787_s13, %s1049_s13   ;;  %s735_s12 = sphi %s785_s12, %s1048_s12  }
   0x8   : > { %p54_p0 = scmp.ne.s32.totalorder %s739_s13, %s735_s12  ;;  %p819_p1 = scmp.eq.s32.totalorder %s492_s18, 0 }
   0x9   : > { %p823_p2 = scmp.eq.s32.totalorder %s492_s18, 1  ;;  %p126_p3 = scmp.eq.s32.totalorder %s493_s19, 1 }
   0xa   : > { %s1033_s20 = scalar_select %p819_p1, 1, 0 }
   0xb   : > { %s1034_s21 = scalar_select %p823_p2, 1, 0 }
   0xc   : > { %p829_p4 = por %p819_p1, %p54_p0  ;;  %p494_p5 = scmp.ge.s32.totalorder %s755_s17, 1 }
   0xd   : > { %p834_p6 = por %p126_p3, %p54_p0  ;;  %p133_p7 = scmp.lt.s32.totalorder %s755_s17, 3 }
   0xe   : > { %s1035_s22 = scalar_select %p829_p4, 1, 0 }
   0xf   : > { %s1036_s23 = scalar_select %p834_p6, 1, 0 }
  0x10   : > { %p839_p8 = pnand %p494_p5, %p133_p7  ;;  %s757_s25 = smov [#allocation6]  }
  0x11   : > { %s145_s26 = sshll.u32 %s757_s25, 4  ;;  %s32_s28 = sadd.s32 1, %s751_s16  ;;  %s146_s26 = int_to_ptr.vmem [resolvable:$true] %s145_s26 }
  0x12   : > { %s1037_s24 = scalar_select %p839_p8, 1, 0 }
  0x13   : > { %p541_p9 = pneg %p839_p8  ;;  %s611_s4 = scalar_lea.hbm %s1026_s1, 512 }
  0x14   : > { %p612_p12 = scmp.ne.s32.totalorder %s1026_s1, %s611_s4  ;;  %p618_p5 = scmp.lt.u32.totalorder %s611_s4, %s1026_s1 }
  0x15   : > { %p848_p11 = pnand %p541_p9, %p819_p1 }
  0x17   : > { %p613_p13 = pneg %p848_p11 }
  0x19   : > { %p614_p0 = pnand %p613_p13, %p612_p12 }
  0x1b   : > { %p615_p3 = pneg %p614_p0 }
  0x1d   : > { %p620_p7 = pnand %p618_p5, %p615_p3 }
  0x1f   : > { %623 = shalt.err (!%p620_p7)
}
  0x20   : > { %s624_s9 = scalar_lea.vmem %s146_s26, 512  ;;  %p632_p1 = scmp.lt.s32.totalorder %s146_s26, %s146_s26 }
  0x21   : > { %p625_p9 = scmp.ne.s32.totalorder %s146_s26, %s624_s9  ;;  %p633_p4 = scmp.lt.s32.totalorder %s624_s9, %s624_s9 }
  0x23   : > { %p627_p10 = pnand %p625_p9, %p613_p13  ;;  %p634_p8 = por %p633_p4, %p632_p1 }
  0x25   : > { %p628_p6 = pneg %p627_p10 }
  0x27   : > { %p635_p2 = pnand %p634_p8, %p628_p6 }
  0x29   : > { %638 = shalt.err (!%p635_p2)
}
  0x2a   : > { %s758_s10 = smov 128   ;;  %s759_s11 = smov 8  }
  0x2b   : > { %544 = dma.hbm_to_vmem [thread:$0]  (!%p848_p11), %s1026_s1, 512, %s146_s26, [#allocation7], %s758_s10, %s758_s10, %s759_s11  }
  0x2c   : > { %p34_p1 = scmp.ge.s32.totalorder %s32_s28, 2  ;;  %s41_s25 = sadd.s32 1, %s743_s14 }
  0x2d   : > { %p48_p2 = scmp.ne.s32.totalorder %s743_s14, %s739_s13  ;;  %p49_p4 = scmp.eq.s32.totalorder %s755_s17, 0 }
  0x2e   : > { %s1054_s28 = smov (%p34_p1, %s32_s28), 0  ;;  %p1040_p8 = scmp.ne.s32.totalorder %s1034_s21, 0 }
  0x2f   : > { %p878_p6 = por %p49_p4, %p48_p2  ;;  %s36_s30 = ssub.s32 %s751_s16, %s1054_s28 }
  0x30   : > { %p884_p10 = por %p1040_p8, %p48_p2  ;;  %p554_p12 = scmp.lt.s32.totalorder %s755_s17, 2 }
  0x31   : > { %p39_p11 = scmp.eq.s32.totalorder %s36_s30, 0  ;;  %s162_s26 = sand.u32 1, %s743_s14  }
  0x32   : > { %s497_s4 = sshll.u32 %s162_s26, 6  ;;  %s510_s6 = sshll.u32 %s751_s16, 10 }
  0x33   : > { %s893_s5 = scalar_select %p39_p11, %s743_s14, %s41_s25  }
  0x34   : > { %s899_s9 = scalar_lea.hbm %s1025_s0, %s510_s6  ;;  %s166_s21 = scalar_lea.vmem [#allocation3], %s497_s4 }
  0x35   : > { %s174_s18 = sshll.u32 %s166_s21, 4  ;;  %p905_p13 = pnand %p554_p12, %p878_p6  ;;  %s901_s18 = int_to_ptr.vmem [resolvable:$true] %s174_s18 }
  0x36   : > { %s909_s25 = scalar_lea.sflag [#allocation4], %s162_s26  ;;  %s639_s30 = scalar_lea.hbm %s899_s9, 1024 }
  0x37   : > { %p640_p0 = scmp.ne.s32.totalorder %s899_s9, %s639_s30  ;;  %p641_p3 = pneg %p905_p13 }
  0x38   : > { %s644_s29 = scalar_lea.hbm %s1025_s0, 2048  ;;  %p645_p9 = scmp.lt.u32.totalorder %s899_s9, %s1025_s0 }
  0x39   : > { %p642_p5 = pnand %p641_p3, %p640_p0  ;;  %p646_p1 = scmp.lt.u32.totalorder %s644_s29, %s639_s30 }
  0x3a   : > { %p648_p4 = scmp.lt.u32.totalorder %s639_s30, %s899_s9 }
  0x3b   : > { %p643_p7 = pneg %p642_p5  ;;  %p647_p2 = por %p646_p1, %p645_p9 }
  0x3d   : > { %p649_p6 = por %p648_p4, %p647_p2 }
  0x3f   : > { %p650_p8 = pnand %p649_p6, %p643_p7 }
  0x41   : > { %653 = shalt.err (!%p650_p8)
}
  0x42   : > { %s654_s26 = scalar_lea.vmem %s901_s18, 1024  ;;  %s760_s21 = smov [#allocation3]  }
  0x43   : > { %p655_p12 = scmp.ne.s32.totalorder %s901_s18, %s654_s26  ;;  %s659_s4 = sshll.u32 %s760_s21, 4  ;;  %s660_s4 = int_to_ptr.vmem [resolvable:$false] %s659_s4 }
  0x44   : > { %s661_s6 = scalar_lea.vmem %s660_s4, 2048  ;;  %p662_p5 = scmp.lt.s32.totalorder %s901_s18, %s660_s4 }
  0x45   : > { %p657_p11 = pnand %p655_p12, %p641_p3  ;;  %p663_p9 = scmp.lt.s32.totalorder %s661_s6, %s654_s26 }
  0x47   : > { %p658_p0 = pneg %p657_p11  ;;  %p664_p1 = por %p663_p9, %p662_p5 }
  0x49   : > { %p665_p2 = pnand %p664_p1, %p658_p0 }
  0x4b   : > { %668 = shalt.err (!%p665_p2)
}
  0x4c   : > { %548 = dma.hbm_to_vmem [thread:$0]  (!%p905_p13), %s899_s9, 1024, %s901_s18, %s909_s25, %s758_s10, %s758_s10, %s759_s11  }
  0x4d   : > { %p1043_p3 = scmp.ne.s32.totalorder %s1037_s24, 0 }
  0x4e   : > { %s943_s30 = sand.u32 (!%p1043_p3), 1, %s739_s13   ;;  %p1044_p7 = scmp.ne.s32.totalorder (!%p1043_p3), %s1035_s22, 0 }
  0x4f   : > { %186 = sbr.rel (%p1043_p3) target bundleno = 341 (0x155), region = 32  ;;  %s501_s29 = sshll.u32 (!%p1043_p3), %s943_s30, 6 }
  0x50   : > { %s189_s7 = scalar_lea.sflag (!%p1043_p3), [#allocation4], %s943_s30  ;;  %s192_s8 = scalar_lea.vmem (!%p1043_p3), [#allocation3], %s501_s29 }
  0x56   : > { %722 = dma.done.wait (%p1044_p7), %s189_s7, 1024  }
  0x57   : > { %724 = vsyncadd (%p1044_p7), %s189_s7, 4294966272  ;;  %p1045_p4 = scmp.ne.s32.totalorder %s1033_s20, 0 }
  0x59   : > { %726 = dma.done.wait (%p1045_p4), [#allocation7], 512  }
  0x5a   : > { %728 = vsyncadd (%p1045_p4), [#allocation7], 4294966784  ;;  %v761_v0 = vmov 0.0|0.0   ;;  %vm762_vm0 = vmmov 0   ;;  %v763_v1 = vmov 0.0   ;;  %vm228_vm1 = vcmask 261120  }
  0x5b   : > { %527 = vmatprep.subr.bf16.mxu0 %v761_v0  ;;  %524 = vmatprep.mubr.msk.f32.mxu0 %vm762_vm0, %v763_v1  ;;  %v285_v2 = vld [vmem:[#allocation6] sm:$0xff]  ;;  %v286_v3 = vld [vmem:[#allocation6 + $0x8] sm:$0xff]  ;;  %v287_v4 = vld [vmem:[#allocation6 + $0x10] sm:$0xff]  ;;  %vm304_vm2 = vcmask 1041409   ;;  %vm306_vm3 = vcmask 1042434   ;;  %vm308_vm4 = vcmask 1043459  }
  0x5c   : > { %v528_v5 = vpack.c.bf16 %v286_v3, %v285_v2  ;;  %v288_v6 = vld [vmem:[#allocation6 + $0x18] sm:$0xff]  ;;  %v220_v7 = vld [vmem:[%s192_s8] sm:$0xff]  ;;  %v221_v8 = vld [vmem:[%s192_s8 + $0x8] sm:$0xff]  ;;  %vm310_vm5 = vcmask 1044484   ;;  %vm312_vm6 = vcmask 1045509   ;;  %vm314_vm7 = vcmask 1046534  }
  0x5d   : > { %v222_v9 = vld [vmem:[%s192_s8 + $0x10] sm:$0xff]  ;;  %v223_v10 = vld [vmem:[%s192_s8 + $0x18] sm:$0xff]  ;;  %v224_v11 = vld [vmem:[%s192_s8 + $0x20] sm:$0xff]  ;;  %v229_v12 = vsel %vm228_vm1, %v220_v7, -inf  ;;  %v236_v13 = vsel %vm228_vm1, %v221_v8, -inf  ;;  %v531_v14 = vpack.c.bf16 %v288_v6, %v287_v4  ;;  %vm316_vm8 = vcmask 1047559  }
  0x5e   : > { %529 = vmatpush3.bf16.msra.mxu0 %v528_v5  ;;  %v225_v15 = vld [vmem:[%s192_s8 + $0x28] sm:$0xff]  ;;  %v226_v16 = vld [vmem:[%s192_s8 + $0x30] sm:$0xff]  ;;  %v227_v17 = vld [vmem:[%s192_s8 + $0x38] sm:$0xff]  ;;  %v230_v18 = vrot.slane %v229_v12, 4  ;;  %v237_v19 = vrot.slane %v236_v13, 4  ;;  %v243_v20 = vsel %vm228_vm1, %v222_v9, -inf }
  0x5f   : > { %530 = vmatprep.subr.bf16.mxu0 %v761_v0  ;;  %v244_v21 = vrot.slane %v243_v20, 4  ;;  %v250_v22 = vsel %vm228_vm1, %v223_v10, -inf  ;;  %v257_v23 = vsel %vm228_vm1, %v224_v11, -inf  ;;  %v264_v24 = vsel %vm228_vm1, %v225_v15, -inf  ;;  %s503_s20 = sshll.u32 %s943_s30, 3  ;;  %s507_s10 = sshll.u32 %s747_s15, 7 }
  0x60   : > { %v231_v25 = vmax.f32 %v229_v12, %v230_v18  ;;  %v238_v26 = vmax.f32 %v236_v13, %v237_v19  ;;  %v251_v27 = vrot.slane %v250_v22, 4  ;;  %v258_v28 = vrot.slane %v257_v23, 4  ;;  %v504_v15 = vld [vmem:[%s1027_s2] ss:$0 sm:$0xff]  ;;  %s218_s11 = scalar_lea.vmem [#allocation8], %s503_s20  ;;  %s976_s25 = scalar_lea.hbm %s1028_s3, %s507_s10 }
  0x61   : > { %v245_v29 = vmax.f32 %v243_v20, %v244_v21  ;;  %v265_v30 = vrot.slane %v264_v24, 4  ;;  %v271_v31 = vsel %vm228_vm1, %v226_v16, -inf  ;;  %v278_v32 = vsel %vm228_vm1, %v227_v17, -inf  ;;  %s405_s9 = sshll.u32 %s218_s11, 4  ;;  %s392_s26 = scalar_lea.sflag [#allocation5], %s943_s30  ;;  %s978_s9 = int_to_ptr.vmem [resolvable:$true] %s405_s9 }
  0x62   : > { %532 = vmatpush3.bf16.msra.mxu0 %v531_v14  ;;  %v232_v33 = vrot.slane %v231_v25, 2  ;;  %v239_v34 = vrot.slane %v238_v26, 2  ;;  %v252_v35 = vmax.f32 %v250_v22, %v251_v27  ;;  %v259_v36 = vmax.f32 %v257_v23, %v258_v28  ;;  %s669_s21 = scalar_lea.vmem %s978_s9, 128  ;;  %s764_s15 = smov [#allocation8]  }
  0x63   : > { %v246_v37 = vrot.slane %v245_v29, 2  ;;  %v266_v38 = vmax.f32 %v264_v24, %v265_v30  ;;  %v272_v39 = vrot.slane %v271_v31, 4  ;;  %v279_v40 = vrot.slane %v278_v32, 4  ;;  %p670_p13 = scmp.ne.s32.totalorder %s978_s9, %s669_s21  ;;  %s673_s4 = sshll.u32 %s764_s15, 4  ;;  %s674_s4 = int_to_ptr.vmem [resolvable:$false] %s673_s4 }
  0x64   : > { %v233_v41 = vmax.f32 %v231_v25, %v232_v33  ;;  %v240_v42 = vmax.f32 %v238_v26, %v239_v34  ;;  %v253_v43 = vrot.slane %v252_v35, 2  ;;  %v260_v44 = vrot.slane %v259_v36, 2  ;;  %s675_s6 = scalar_lea.vmem %s674_s4, 256  ;;  %p676_p12 = scmp.lt.s32.totalorder %s978_s9, %s674_s4 }
  0x65   : > { %v247_v45 = vmax.f32 %v245_v29, %v246_v37  ;;  %v267_v46 = vrot.slane %v266_v38, 2  ;;  %v273_v47 = vmax.f32 %v271_v31, %v272_v39  ;;  %v280_v48 = vmax.f32 %v278_v32, %v279_v40  ;;  %p671_p6 = pnand %p670_p13, %p884_p10  ;;  %p677_p11 = scmp.lt.s32.totalorder %s675_s6, %s669_s21 }
  0x66   : > { %v234_v49 = vrot.slane %v233_v41, 1  ;;  %v241_v50 = vrot.slane %v240_v42, 1  ;;  %v254_v51 = vmax.f32 %v252_v35, %v253_v43  ;;  %v261_v52 = vmax.f32 %v259_v36, %v260_v44 }
  0x67   : > { %v248_v53 = vrot.slane %v247_v45, 1  ;;  %v268_v54 = vmax.f32 %v266_v38, %v267_v46  ;;  %v274_v55 = vrot.slane %v273_v47, 2  ;;  %v281_v56 = vrot.slane %v280_v48, 2  ;;  %p672_p8 = pneg %p671_p6  ;;  %p678_p0 = por %p677_p11, %p676_p12 }
  0x68   : > { %v235_v57 = vmax.f32 %v233_v41, %v234_v49  ;;  %v242_v58 = vmax.f32 %v240_v42, %v241_v50  ;;  %v255_v59 = vrot.slane %v254_v51, 1  ;;  %v262_v60 = vrot.slane %v261_v52, 1 }
  0x69   : > { %v249_v61 = vmax.f32 %v247_v45, %v248_v53  ;;  %v269_v62 = vrot.slane %v268_v54, 1  ;;  %v275_v63 = vmax.f32 %v273_v47, %v274_v55  ;;  %v282_v0 = vmax.f32 %v280_v48, %v281_v56  ;;  %p679_p5 = pnand %p678_p0, %p672_p8 }
  0x6a   : > { %v256_v1 = vmax.f32 %v254_v51, %v255_v59  ;;  %v263_v2 = vmax.f32 %v261_v52, %v262_v60  ;;  %v305_v3 = vsel %vm304_vm2, %v242_v58, %v235_v57 }
  0x6b   : > { %v270_v4 = vmax.f32 %v268_v54, %v269_v62  ;;  %v276_v5 = vrot.slane %v275_v63, 1  ;;  %v283_v6 = vrot.slane %v282_v0, 1  ;;  %v307_v7 = vsel %vm306_vm3, %v249_v61, %v305_v3 }
  0x6c   : > { %v309_v8 = vsel %vm308_vm4, %v256_v1, %v307_v7 }
  0x6d   : > { %v277_v9 = vmax.f32 %v275_v63, %v276_v5  ;;  %v284_v10 = vmax.f32 %v282_v0, %v283_v6  ;;  %v311_v11 = vsel %vm310_vm5, %v263_v2, %v309_v8 }
  0x6e   : > { %v313_v12 = vsel %vm312_vm6, %v270_v4, %v311_v11 }
  0x6f   : > { %v315_v13 = vsel %vm314_vm7, %v277_v9, %v313_v12 }
  0x70   : > { %v317_v14 = vsel %vm316_vm8, %v284_v10, %v315_v13 }
  0x71   : > { %525 = vmatmul.mubr.msk.f32.vlgmr.msra.gmra.mrb[0].mxu0 %vm228_vm1, %v317_v14 }
 0x144   : > { %v386_v16 = vpop.f32.mrb[0].mxu0 }
 0x145   : > { %v387_v17 = vadd.f32 %v504_v15, %v386_v16  ;;  %v526_v18 = vpop.f32.mrb[1].mxu0 }
 0x147   : > { %390 = vst [vmem:[%s218_s11] sm:$0xff] %v387_v17 }
 0x148   : > { %682 = shalt.err (!%p679_p5)
}
 0x149   : > { %s683_s30 = scalar_lea.hbm %s976_s25, 128  ;;  %s687_s8 = scalar_lea.hbm %s1028_s3, 256 }
 0x14a   : > { %p684_p9 = scmp.ne.s32.totalorder %s976_s25, %s683_s30  ;;  %p688_p3 = scmp.lt.u32.totalorder %s976_s25, %s1028_s3 }
 0x14b   : > { %p689_p7 = scmp.lt.u32.totalorder %s687_s8, %s683_s30  ;;  %p691_p13 = scmp.lt.u32.totalorder %s683_s30, %s976_s25 }
 0x14c   : > { %p685_p1 = pnand %p684_p9, %p884_p10 }
 0x14d   : > { %p690_p4 = por %p689_p7, %p688_p3 }
 0x14e   : > { %p686_p2 = pneg %p685_p1 }
 0x14f   : > { %p692_p6 = por %p691_p13, %p690_p4 }
 0x151   : > { %p693_p8 = pnand %p692_p6, %p686_p2 }
 0x153   : > { %696 = shalt.err (!%p693_p8)
}
 0x154   : > { %539 = dma.vmem_to_hbm [thread:$0]  (%p884_p10), %s978_s9, 128, %s976_s25, %s392_s26  }
 0x155 PF: > { %s417_s24 = sand.u32 1, %s735_s12   ;;  %p1046_p12 = scmp.ne.s32.totalorder %s1036_s23, 0 }
 0x156   : > { %p1047_p11 = scmp.ge.s32.totalorder %s755_s17, 2  ;;  %s418_s10 = scalar_lea.sflag [#allocation5], %s417_s24 }
 0x158   : > { %p550_p0 = pnand %p1047_p11, %p1046_p12 }
 0x15a   : > { %730 = dma.done.wait (!%p550_p0), %s418_s10, 128  }
 0x15b   : > { %732 = vsyncadd (!%p550_p0), %s418_s10, 4294967168  ;;  %s20_s17 = sadd.s32 1, %s755_s17   ;;  %s1048_s12 = smov %s739_s13 }
 0x15c   : > { %p17_p5 = scmp.ge.s32.totalorder %s20_s17, 4   ;;  %s1049_s13 = smov %s743_s14 }
 0x15d   : > { %s1050_s14 = smov %s893_s5  ;;  %s1051_s15 = smov %s751_s16 }
 0x15e   : > { %s1052_s16 = smov %s1054_s28  ;;  %19 = sbr.rel (!%p17_p5) target bundleno = 7 (0x7), region = 81 }
 0x165   :  { %423 = vsyncpa [#allocation4], 1 }
 0x166   :  { %425 = vsyncpa [#allocation4 + $0x1], 1 }
 0x167   :  { %426 = vsyncpa [#allocation7], 1 }
 0x168   :  { %427 = vsyncpa [#allocation5], 1 }
 0x169   :  { %429 = vsyncpa [#allocation5 + $0x1], 1 }

</bundles_post_ra>
